<compile_context>
chip_gen: v6e
topology: v6e:2x2x1
jax: 0.10.0
libtpu: 0.0.40
codegen_flags: <defaults>
</compile_context>

<pallas_src>
import jax
import jax.numpy as jnp
import numpy as np
from jax.experimental import pallas as pl
from jax.experimental.pallas import tpu as pltpu

_LANE = 128
_SUBLANE = 8
_VMEM_LIMIT = 32 * 1024 * 1024  # explicit; within physical VMEM on v5e/v6e/v7x


def _round_up(x, m):
    return (x + m - 1) // m * m


# ---------------------------------------------------------------------------
# Pass 1: conv-as-one-matmul + per-channel sum / sum-of-squares accumulation.
# ---------------------------------------------------------------------------
def _conv_stats_kernel(p_ref, w_ref, y_ref, ssum_ref, ssq_ref):
    # ssum/ssq output blocks are resident across the whole (arbitrary) M axis.
    @pl.when(pl.program_id(0) == 0)
    def _init():
        ssum_ref[...] = jnp.zeros_like(ssum_ref)
        ssq_ref[...] = jnp.zeros_like(ssq_ref)

    # One MXU matmul per tile: [TM, K*K*Cin] x [K*K*Cin, Cout_pad] -> f32.
    y = jnp.dot(p_ref[...], w_ref[...], preferred_element_type=jnp.float32)
    y_ref[...] = y

    # Running batch statistics (zero-padded rows contribute exactly 0).
    ssum_ref[...] += jnp.sum(y, axis=0, keepdims=True)
    ssq_ref[...] += jnp.sum(y * y, axis=0, keepdims=True)


# ---------------------------------------------------------------------------
# Pass 2: folded batch-norm (per-channel scale/shift) + ReLU, lane-dense.
# ---------------------------------------------------------------------------
def _bn_relu_kernel(y_ref, scale_ref, shift_ref, o_ref):
    o_ref[...] = jnp.maximum(
        y_ref[...] * scale_ref[...] + shift_ref[...], 0.0
    ).astype(o_ref.dtype)


def conv_block_forward(x_nchw, w_oihw, bias, gamma, beta, *,
                       kernel_size=3, stride=1, padding=1, eps=1e-5,
                       block_m=512):
    """ConvBlock forward. x_nchw: [N, Cin, H, W] -> [N, Cout, H, W]."""
    assert stride == 1, "this kernel implements the default stride=1 block"
    N, Cin, H, W = x_nchw.shape
    Cout = w_oihw.shape[0]
    K = kernel_size
    Ho = H + 2 * padding - (K - 1)
    Wo = W + 2 * padding - (K - 1)
    M = N * Ho * Wo
    KKC = K * K * Cin
    Cpad = _round_up(Cout, _LANE)

    # Conv bias cancels exactly under training-mode BatchNorm (the batch mean
    # absorbs it), so it never needs to enter the kernel.
    del bias

    # ---- glue: NCHW -> NHWC, spatial pad, im2col (done once by XLA) ----
    x_nhwc = jnp.transpose(x_nchw, (0, 2, 3, 1)).astype(jnp.float32)
    x_sp = jnp.pad(x_nhwc, ((0, 0), (padding, padding), (padding, padding), (0, 0)))
    cols = [
        jax.lax.slice(x_sp, (0, kh, kw, 0), (N, kh + Ho, kw + Wo, Cin))
        for kh in range(K) for kw in range(K)
    ]
    patches = jnp.concatenate(cols, axis=-1).reshape(M, KKC)

    # Tile rows; pad M up to a multiple of the tile (zero rows add nothing to
    # the conv output nor to the batch statistics).
    tm = _round_up(min(block_m, _round_up(M, _SUBLANE)), _SUBLANE)
    Mpad = _round_up(M, tm)
    patches = jnp.pad(patches, ((0, Mpad - M), (0, 0)))
    grid = (Mpad // tm,)

    # w2d[(kh*K + kw)*Cin + ci, co] = W[co, ci, kh, kw]; zero-pad to 128 lanes.
    w2d = jnp.transpose(w_oihw, (2, 3, 1, 0)).reshape(KKC, Cout).astype(jnp.float32)
    w2d = jnp.pad(w2d, ((0, 0), (0, Cpad - Cout)))

    # ---------------- pass 1: conv + per-channel sum / sumsq ----------------
    flops1 = 2 * Mpad * KKC * Cpad
    bytes1 = 4 * (Mpad * KKC + KKC * Cpad + Mpad * Cpad + 2 * Cpad)
    y2d, ssum, ssq = pl.pallas_call(
        _conv_stats_kernel,
        out_shape=(
            jax.ShapeDtypeStruct((Mpad, Cpad), jnp.float32),
            jax.ShapeDtypeStruct((1, Cpad), jnp.float32),
            jax.ShapeDtypeStruct((1, Cpad), jnp.float32),
        ),
        grid_spec=pltpu.PrefetchScalarGridSpec(
            num_scalar_prefetch=0,
            grid=grid,
            in_specs=[
                pl.BlockSpec((tm, KKC), lambda i: (i, 0)),
                pl.BlockSpec((KKC, Cpad), lambda i: (0, 0)),
            ],
            out_specs=[
                pl.BlockSpec((tm, Cpad), lambda i: (i, 0)),
                pl.BlockSpec((1, Cpad), lambda i: (0, 0)),
                pl.BlockSpec((1, Cpad), lambda i: (0, 0)),
            ],
        ),
        compiler_params=pltpu.CompilerParams(
            dimension_semantics=("arbitrary",),   # stats accumulate across tiles
            vmem_limit_bytes=_VMEM_LIMIT,
        ),
        cost_estimate=pl.CostEstimate(
            flops=flops1, transcendentals=0, bytes_accessed=bytes1),
    )(patches, w2d)

    # ---- fold BN into per-channel scale/shift (tiny per-channel math) ----
    inv_m = 1.0 / float(M)                      # true M, not the padded count
    mean = ssum * inv_m
    var = jnp.maximum(ssq * inv_m - mean * mean, 0.0)   # biased variance
    g2d = jnp.pad(gamma.reshape(1, Cout).astype(jnp.float32),
                  ((0, 0), (0, Cpad - Cout)))
    b2d = jnp.pad(beta.reshape(1, Cout).astype(jnp.float32),
                  ((0, 0), (0, Cpad - Cout)))
    scale = g2d * jax.lax.rsqrt(var + eps)
    shift = b2d - mean * scale

    # ---------------- pass 2: normalize (scale/shift) + ReLU ----------------
    flops2 = 3 * Mpad * Cpad
    bytes2 = 4 * (2 * Mpad * Cpad + 2 * Cpad)
    out2d = pl.pallas_call(
        _bn_relu_kernel,
        out_shape=jax.ShapeDtypeStruct((Mpad, Cpad), jnp.float32),
        grid_spec=pltpu.PrefetchScalarGridSpec(
            num_scalar_prefetch=0,
            grid=grid,
            in_specs=[
                pl.BlockSpec((tm, Cpad), lambda i: (i, 0)),
                pl.BlockSpec((1, Cpad), lambda i: (0, 0)),
                pl.BlockSpec((1, Cpad), lambda i: (0, 0)),
            ],
            out_specs=pl.BlockSpec((tm, Cpad), lambda i: (i, 0)),
        ),
        compiler_params=pltpu.CompilerParams(
            dimension_semantics=("parallel",),    # shard M tiles on v7x megacore
            vmem_limit_bytes=_VMEM_LIMIT,
        ),
        cost_estimate=pl.CostEstimate(
            flops=flops2, transcendentals=0, bytes_accessed=bytes2),
    )(y2d, scale, shift)

    # ---- glue: strip padding, [M, Cout] -> NCHW ----
    out = out2d[:M, :Cout].reshape(N, Ho, Wo, Cout)
    return jnp.transpose(out, (0, 3, 1, 2))


def _reference(x_nchw, w_oihw, bias, gamma, beta, eps=1e-5):
    """Pure-JAX reference matching PyTorch ConvBlock forward (train-mode BN)."""
    y = jax.lax.conv_general_dilated(
        x_nchw, w_oihw, window_strides=(1, 1), padding=((1, 1), (1, 1)),
        dimension_numbers=("NCHW", "OIHW", "NCHW"))
    y = y + bias[None, :, None, None]
    mean = jnp.mean(y, axis=(0, 2, 3), keepdims=True)
    var = jnp.mean((y - mean) ** 2, axis=(0, 2, 3), keepdims=True)
    y = (y - mean) / jnp.sqrt(var + eps)
    y = y * gamma[None, :, None, None] + beta[None, :, None, None]
    return jnp.maximum(y, 0.0)


if __name__ == "__main__":
    # Small shapes consistent with the module: batch=2, in_ch=4, out_ch=8, 16x16.
    N, Cin, Cout, H, W, K = 2, 4, 8, 16, 16, 3

    key = jax.random.PRNGKey(0)
    kx, kw, kb = jax.random.split(key, 3)

    x = jax.random.normal(kx, (N, Cin, H, W), dtype=jnp.float32)

    # Deterministic parameter init (synthetic; matches nn.Conv2d / nn.BatchNorm2d shapes).
    fan_in = Cin * K * K
    w = jax.random.uniform(kw, (Cout, Cin, K, K), jnp.float32,
                           minval=-1.0, maxval=1.0) / np.sqrt(fan_in)
    b = jax.random.uniform(kb, (Cout,), jnp.float32,
                           minval=-1.0, maxval=1.0) / np.sqrt(fan_in)
    gamma = jnp.ones((Cout,), jnp.float32)   # BatchNorm2d default weight
    beta = jnp.zeros((Cout,), jnp.float32)   # BatchNorm2d default bias

    # block_m=128 so the toy problem (M = 2*16*16 = 512 rows) still exercises a
    # multi-tile grid (4 tiles) and the cross-tile statistics accumulation path.
    out = conv_block_forward(x, w, b, gamma, beta, block_m=128)
    out = jax.block_until_ready(out)

    ref = _reference(x, w, b, gamma, beta)
    np.testing.assert_allclose(np.asarray(out), np.asarray(ref), atol=1e-4, rtol=1e-4)

    print("KERNEL_OK")
</pallas_src>

<mosaic_0001>
module attributes {stable_mosaic.version = 11 : i64} {
  func.func @_conv_stats_kernel(%arg0: i32, %arg1: memref<128x36xf32, #tpu.memory_space<vmem>>, %arg2: memref<36x128xf32, #tpu.memory_space<vmem>>, %arg3: memref<128x128xf32, #tpu.memory_space<vmem>>, %arg4: memref<1x128xf32, #tpu.memory_space<vmem>>, %arg5: memref<1x128xf32, #tpu.memory_space<vmem>>) attributes {dimension_semantics = [#tpu.dimension_semantics<arbitrary>], iteration_bounds = array<i64: 4>, scalar_prefetch = 0 : i64, scratch_operands = 0 : i64, tpu.core_type = #tpu.core_type<tc>, window_params = [{transform_indices = @transform_0, window_bounds = array<i64: 128, 36>}, {pipeline_mode = #tpu.pipeline_mode<synchronous>, transform_indices = @transform_1, window_bounds = array<i64: 36, 128>}, {transform_indices = @transform_2, window_bounds = array<i64: 128, 128>}, {pipeline_mode = #tpu.pipeline_mode<synchronous>, transform_indices = @transform_3, window_bounds = array<i64: 1, 128>}, {pipeline_mode = #tpu.pipeline_mode<synchronous>, transform_indices = @transform_4, window_bounds = array<i64: 1, 128>}]} {
    %c0_i32 = arith.constant 0 : i32
    %0 = arith.cmpi eq, %arg0, %c0_i32 : i32
    %1 = arith.extui %0 : i1 to i32
    %c0_i32_0 = arith.constant 0 : i32
    %2 = arith.cmpi ne, %1, %c0_i32_0 : i32
    scf.if %2 {
      %cst_16 = arith.constant 0.000000e+00 : f32
      %18 = vector.broadcast %cst_16 : f32 to vector<1x128xf32>
      %c0_17 = arith.constant 0 : index
      %c0_18 = arith.constant 0 : index
      %19 = vector.load %arg4[%c0_17, %c0_18] : memref<1x128xf32, #tpu.memory_space<vmem>>, vector<1x128xf32>
      tpu.vector_store %arg4[%c0_17, %c0_18], %18 {strides = array<i32>} : memref<1x128xf32, #tpu.memory_space<vmem>>, vector<1x128xf32>,
      %cst_19 = arith.constant 0.000000e+00 : f32
      %20 = vector.broadcast %cst_19 : f32 to vector<1x128xf32>
      %c0_20 = arith.constant 0 : index
      %c0_21 = arith.constant 0 : index
      %21 = vector.load %arg5[%c0_20, %c0_21] : memref<1x128xf32, #tpu.memory_space<vmem>>, vector<1x128xf32>
      tpu.vector_store %arg5[%c0_20, %c0_21], %20 {strides = array<i32>} : memref<1x128xf32, #tpu.memory_space<vmem>>, vector<1x128xf32>,
    } else {
    }
    %c0 = arith.constant 0 : index
    %c0_1 = arith.constant 0 : index
    %3 = vector.load %arg1[%c0, %c0_1] : memref<128x36xf32, #tpu.memory_space<vmem>>, vector<128x36xf32>
    %c0_2 = arith.constant 0 : index
    %c0_3 = arith.constant 0 : index
    %4 = vector.load %arg2[%c0_2, %c0_3] : memref<36x128xf32, #tpu.memory_space<vmem>>, vector<36x128xf32>
    %cst = arith.constant dense<0.000000e+00> : vector<128x128xf32>
    %5 = tpu.matmul %3, %4, %cst {dimension_numbers = #tpu.dot_dimension_numbers<[1], [0], [0], [1], [0, 0, 1, 1], [], []>} : vector<128x36xf32>, vector<36x128xf32>, vector<128x128xf32> -> vector<128x128xf32>
    %c0_4 = arith.constant 0 : index
    %c0_5 = arith.constant 0 : index
    %6 = vector.load %arg3[%c0_4, %c0_5] : memref<128x128xf32, #tpu.memory_space<vmem>>, vector<128x128xf32>
    tpu.vector_store %arg3[%c0_4, %c0_5], %5 {strides = array<i32>} : memref<128x128xf32, #tpu.memory_space<vmem>>, vector<128x128xf32>,
    %c0_6 = arith.constant 0 : index
    %c0_7 = arith.constant 0 : index
    %7 = vector.load %arg4[%c0_6, %c0_7] : memref<1x128xf32, #tpu.memory_space<vmem>>, vector<1x128xf32>
    %cst_8 = arith.constant dense<0.000000e+00> : vector<128xf32>
    %8 = vector.multi_reduction <add>, %5, %cst_8 [0] : vector<128x128xf32> to vector<128xf32>
    %9 = vector.shape_cast %8 : vector<128xf32> to vector<1x128xf32>
    %10 = arith.addf %7, %9 : vector<1x128xf32>
    %c0_9 = arith.constant 0 : index
    %c0_10 = arith.constant 0 : index
    %11 = vector.load %arg4[%c0_9, %c0_10] : memref<1x128xf32, #tpu.memory_space<vmem>>, vector<1x128xf32>
    tpu.vector_store %arg4[%c0_9, %c0_10], %10 {strides = array<i32>} : memref<1x128xf32, #tpu.memory_space<vmem>>, vector<1x128xf32>,
    %c0_11 = arith.constant 0 : index
    %c0_12 = arith.constant 0 : index
    %12 = vector.load %arg5[%c0_11, %c0_12] : memref<1x128xf32, #tpu.memory_space<vmem>>, vector<1x128xf32>
    %13 = arith.mulf %5, %5 : vector<128x128xf32>
    %cst_13 = arith.constant dense<0.000000e+00> : vector<128xf32>
    %14 = vector.multi_reduction <add>, %13, %cst_13 [0] : vector<128x128xf32> to vector<128xf32>
    %15 = vector.shape_cast %14 : vector<128xf32> to vector<1x128xf32>
    %16 = arith.addf %12, %15 : vector<1x128xf32>
    %c0_14 = arith.constant 0 : index
    %c0_15 = arith.constant 0 : index
    %17 = vector.load %arg5[%c0_14, %c0_15] : memref<1x128xf32, #tpu.memory_space<vmem>>, vector<1x128xf32>
    tpu.vector_store %arg5[%c0_14, %c0_15], %16 {strides = array<i32>} : memref<1x128xf32, #tpu.memory_space<vmem>>, vector<1x128xf32>,
    return
  }
  func.func @transform_0(%arg0: i32) -> (i32, i32) {
    %c0_i32 = arith.constant 0 : i32
    %c0_i32_0 = arith.constant 0 : i32
    return %arg0, %c0_i32 : i32, i32
  }
  func.func @transform_1(%arg0: i32) -> (i32, i32) {
    %c0_i32 = arith.constant 0 : i32
    %c0_i32_0 = arith.constant 0 : i32
    %c0_i32_1 = arith.constant 0 : i32
    return %c0_i32, %c0_i32_0 : i32, i32
  }
  func.func @transform_2(%arg0: i32) -> (i32, i32) {
    %c0_i32 = arith.constant 0 : i32
    %c0_i32_0 = arith.constant 0 : i32
    return %arg0, %c0_i32 : i32, i32
  }
  func.func @transform_3(%arg0: i32) -> (i32, i32) {
    %c0_i32 = arith.constant 0 : i32
    %c0_i32_0 = arith.constant 0 : i32
    %c0_i32_1 = arith.constant 0 : i32
    return %c0_i32, %c0_i32_0 : i32, i32
  }
  func.func @transform_4(%arg0: i32) -> (i32, i32) {
    %c0_i32 = arith.constant 0 : i32
    %c0_i32_0 = arith.constant 0 : i32
    %c0_i32_1 = arith.constant 0 : i32
    return %c0_i32, %c0_i32_0 : i32, i32
  }
}

</mosaic_0001>

<bundles_post_ra>
// kernel: tpu_custom_call.1
= control target key start
LH: loop header
LB: loop body
LE: loop exit
PB: predicated region body
PF: predicated region fallthrough
CT: control target
= control target key end

     0   :  { %10 = vsyncpa [#allocation3], 0  ;;  %s1144_s0 = inlined_call_operand.vmem [shape: f32[512,36], index: 0, kind: input, shape index: {}]   ;;  %s1145_s1 = inlined_call_operand.vmem [shape: f32[36,128], index: 1, kind: input, shape index: {}]   ;;  %s1146_s2 = inlined_call_operand.hbm [shape: f32[512,128], index: 2, kind: output, shape index: {0}]   ;;  %s1147_s3 = inlined_call_operand.hbm [shape: f32[1,128], index: 3, kind: output, shape index: {1}]   ;;  %s1148_s4 = inlined_call_operand.hbm [shape: f32[1,128], index: 4, kind: output, shape index: {2}]  }
   0x1   :  { %12 = vsyncpa [#allocation3 + $0x1], 0 }
   0x2   :  { %13 = vsyncpa [#allocation5], 0  ;;  %s920_s15 = smov 0   ;;  %s922_s16 = smov 0  }
   0x3   :  { %s924_s17 = smov 0   ;;  %s926_s18 = smov 0  }
   0x4 LB: > { %s941_s19 = sadd.s32 4294967295, %s887_s18   ;;  %s619_s20 = sadd.s32 4294967294, %s887_s18   ;;  %s887_s18 = sphi %s926_s18, %s1154_s18   ;;  %s883_s17 = sphi %s924_s17, %s1153_s17   ;;  %s879_s16 = sphi %s922_s16, %s1152_s16   ;;  %s875_s15 = sphi %s920_s15, %s1151_s15  }
   0x5   : > { %s945_s21 = sadd.s32 1, %s887_s18   ;;  %s73_s22 = sadd.s32 1, %s883_s17 }
   0x6   : > { %s70_s23 = ssub.s32 %s887_s18, %s945_s21  ;;  %p83_p0 = scmp.ne.s32.totalorder %s883_s17, %s879_s16 }
   0x7   : > { %p71_p1 = scmp.eq.s32.totalorder %s70_s23, 0  ;;  %p84_p2 = scmp.eq.s32.totalorder %s941_s19, 3 }
   0x8   : > { %p89_p3 = scmp.ne.s32.totalorder %s879_s16, %s875_s15  ;;  %p90_p4 = scmp.eq.s32.totalorder %s619_s20, 3 }
   0x9   : > { %s956_s24 = scalar_select %p71_p1, %s883_s17, %s73_s22  }
   0xa   : > { %p960_p5 = por %p84_p2, %p83_p0  ;;  %p964_p6 = por %p90_p4, %p89_p3 }
   0xb   : > { %p622_p7 = scmp.ge.s32.totalorder %s887_s18, 1  ;;  %p162_p8 = scmp.lt.s32.totalorder %s887_s18, 5 }
   0xd   : > { %p163_p9 = pnand %p622_p7, %p162_p8 }
   0xe   : > { %s181_s27 = sand.u32 (!%p163_p9), 1, %s879_s16   ;;  %s624_s28 = sshll.u32 (!%p163_p9), %s941_s19, 4 }
   0xf   : > { %166 = sbr.rel (%p163_p9) target bundleno = 305 (0x131), region = 28  ;;  %s623_s29 = sshll.u32 (!%p163_p9), %s181_s27, 7 }
  0x10   : > { %p189_p10 = scmp.lt.s32.totalorder (!%p163_p9), %s624_s28, 63  ;;  %s979_s8 = scalar_lea.vmem (!%p163_p9), [#allocation2], %s623_s29 }
  0x11   : > { %p626_p11 = scmp.ne.s32.totalorder (!%p163_p9), %s941_s19, 0 }
  0x14   : > { %s1156_s28 = smov (!%p189_p10, %s624_s28), 63  ;;  %198 = sbr.rel (%p626_p11) target bundleno = 27 (0x1b), region = 32 }
  0x15   : > { %s625_s30 = sshll.u32 %s1156_s28, 3 }
  0x16   : > { %s977_s7 = scalar_lea.vmem %s1144_s0, %s625_s30 }
  0x19   : > { %v889_v0 = vmov 0.0  }
  0x1a   : > { %199 = vst [vmem:[#allocation4] sm:$0x1] %v889_v0  ;;  %200 = vst [vmem:[#allocation6] sm:$0x1] %v889_v0 }
  0x1b PF: > { %v221_v1 = vld [vmem:[%s1145_s1 + $0x20] sm:$0xf]  ;;  %vm271_vm0 = vcmask 1043456   ;;  %v220_v2 = vld [vmem:[%s1145_s1 + $0x18] sm:$0xff]  ;;  %vm222_vm1 = vcmask 293888   ;;  %v219_v4 = vld [vmem:[%s1145_s1 + $0x10] sm:$0xff] }
  0x1c   : > { %675 = vmatprep.subr.msk.mxu0 %vm271_vm0, %v221_v1  ;;  %v201_v3 = vld [vmem:[%s977_s7] sm:$0xff]  ;;  %709 = vmatprep.subr.msk.mxu1 %vm271_vm0, %v221_v1  ;;  %v218_v5 = vld [vmem:[%s1145_s1 + $0x8] sm:$0xff]  ;;  %v203_v8 = vld [vmem:[%s977_s7 + $0x10] sm:$0xff]  ;;  %s653_s29 = sshll.u32 %s941_s19, 11  ;;  %s514_s30 = sshll.u32 %s979_s8, 4  ;;  %s1064_s30 = int_to_ptr.vmem [resolvable:$true] %s514_s30 }
  0x1d   : > { %676 = vmatpush3.msk.msra.mxu0 %vm271_vm0, %v221_v1  ;;  %685 = vmatprep.mubr.msk.f32.mxu0 %vm222_vm1, %v201_v3  ;;  %v217_v6 = vld [vmem:[%s1145_s1] sm:$0xff]  ;;  %v202_v7 = vld [vmem:[%s977_s7 + $0x8] sm:$0xff]  ;;  %v211_v11 = vld [vmem:[%s977_s7 + $0x50] sm:$0xff]  ;;  %s1071_s9 = scalar_lea.sflag [#allocation3], %s181_s27  ;;  %s775_s10 = scalar_lea.vmem %s1064_s30, 2048 }
  0x1e   : > { %677 = vmatprep.subr.mxu0 %v220_v2  ;;  %714 = vmatpush3.msk.msra.mxu1 %vm271_vm0, %v221_v1  ;;  %v209_v9 = vld [vmem:[%s977_s7 + $0x40] sm:$0xff]  ;;  %v210_v10 = vld [vmem:[%s977_s7 + $0x48] sm:$0xff]  ;;  %v204_v12 = vld [vmem:[%s977_s7 + $0x18] sm:$0xff]  ;;  %p776_p12 = scmp.ne.s32.totalorder %s1064_s30, %s775_s10  ;;  %s890_s11 = smov [#allocation2]  }
  0x1f   : > { %678 = vmatpush3.msra.mxu0 %v220_v2  ;;  %710 = vmatprep.subr.mxu1 %v220_v2  ;;  %v205_v13 = vld [vmem:[%s977_s7 + $0x20] sm:$0xff]  ;;  %v212_v14 = vld [vmem:[%s977_s7 + $0x58] sm:$0xff]  ;;  %v206_v16 = vld [vmem:[%s977_s7 + $0x28] sm:$0xff]  ;;  %s779_s12 = sshll.u32 %s890_s11, 4  ;;  %s780_s12 = int_to_ptr.vmem [resolvable:$false] %s779_s12 }
  0x20   : > { %679 = vmatprep.subr.mxu0 %v219_v4  ;;  %715 = vmatpush3.msra.mxu1 %v220_v2  ;;  %v213_v15 = vld [vmem:[%s977_s7 + $0x60] sm:$0xff]  ;;  %v207_v17 = vld [vmem:[%s977_s7 + $0x30] sm:$0xff]  ;;  %v214_v18 = vld [vmem:[%s977_s7 + $0x68] sm:$0xff]  ;;  %p777_p13 = pnand %p776_p12, %p960_p5  ;;  %s781_s13 = scalar_lea.vmem %s780_s12, 4096 }
  0x21   : > { %680 = vmatpush3.msra.mxu0 %v219_v4  ;;  %711 = vmatprep.subr.mxu1 %v219_v4  ;;  %v215_v19 = vld [vmem:[%s977_s7 + $0x70] sm:$0xff]  ;;  %v208_v20 = vld [vmem:[%s977_s7 + $0x38] sm:$0xff]  ;;  %p782_p1 = scmp.lt.s32.totalorder %s1064_s30, %s780_s12  ;;  %p783_p3 = scmp.lt.s32.totalorder %s781_s13, %s775_s10 }
  0x22   : > { %681 = vmatprep.subr.mxu0 %v218_v5  ;;  %716 = vmatpush3.msra.mxu1 %v219_v4  ;;  %v216_v21 = vld [vmem:[%s977_s7 + $0x78] sm:$0xff]  ;;  %s1062_s7 = scalar_lea.hbm %s1146_s2, %s653_s29  ;;  %p778_p0 = pneg %p777_p13 }
  0x23   : > { %682 = vmatpush3.msra.mxu0 %v218_v5  ;;  %712 = vmatprep.subr.mxu1 %v218_v5  ;;  %p784_p4 = por %p783_p3, %p782_p1 }
  0x24   : > { %683 = vmatprep.subr.mxu0 %v217_v6  ;;  %717 = vmatpush3.msra.mxu1 %v218_v5 }
  0x25   : > { %684 = vmatpush3.msra.mxu0 %v217_v6  ;;  %713 = vmatprep.subr.mxu1 %v217_v6  ;;  %p785_p7 = pnand %p784_p4, %p778_p0 }
  0x26   : > { %686 = vmatmul.mubr.msk.f32.vlgmr.msra.gmra.mxu0 %vm222_vm1, %v202_v7  ;;  %718 = vmatpush3.msra.mxu1 %v217_v6 }
  0x27   : > { %688 = vmatprep.mubr.msk.f32.mxu0 %vm222_vm1, %v203_v8  ;;  %697 = vmatprep.mubr.msk.f32.mxu1 %vm222_vm1, %v209_v9 }
  0x28   : > { %698 = vmatmul.mubr.msk.f32.vlgmr.msra.gmra.mxu1 %vm222_vm1, %v210_v10 }
  0x29   : > { %700 = vmatprep.mubr.msk.f32.mxu1 %vm222_vm1, %v211_v11 }
  0x2a   : > { %689 = vmatmul.mubr.msk.f32.gmra.mxu0 %vm222_vm1, %v204_v12 }
  0x2b   : > { %691 = vmatprep.mubr.msk.f32.mxu0 %vm222_vm1, %v205_v13 }
  0x2c   : > { %701 = vmatmul.mubr.msk.f32.gmra.mxu1 %vm222_vm1, %v212_v14 }
  0x2d   : > { %703 = vmatprep.mubr.msk.f32.mxu1 %vm222_vm1, %v213_v15 }
  0x2e   : > { %692 = vmatmul.mubr.msk.f32.gmra.mxu0 %vm222_vm1, %v206_v16 }
  0x2f   : > { %694 = vmatprep.mubr.msk.f32.mxu0 %vm222_vm1, %v207_v17 }
  0x30   : > { %704 = vmatmul.mubr.msk.f32.gmra.mxu1 %vm222_vm1, %v214_v18 }
  0x31   : > { %706 = vmatprep.mubr.msk.f32.mxu1 %vm222_vm1, %v215_v19 }
  0x32   : > { %695 = vmatmul.mubr.msk.f32.gmra.mxu0 %vm222_vm1, %v208_v20 }
  0x34   : > { %707 = vmatmul.mubr.msk.f32.gmra.mxu1 %vm222_vm1, %v216_v21 }
  0xe6   : > { %v687_v22 = vpop.f32.mrf.mxu0 }
  0xe7   : > { %421 = vst [vmem:[%s979_s8 + $0x8] sm:$0xff] %v687_v22  ;;  %v462_v28 = vmul.f32 %v687_v22, %v687_v22 }
  0xe8   : > { %v341_v23 = vpop.f32.mrf.mxu0  ;;  %v1030_v24 = vpop.f32.mrf.mxu1 }
  0xe9   : > { %420 = vst [vmem:[%s979_s8] sm:$0xff] %v341_v23  ;;  %v461_v25 = vmul.f32 %v341_v23, %v341_v23  ;;  %429 = vst [vmem:[%s979_s8 + $0x48] sm:$0xff] %v1030_v24  ;;  %v437_v29 = vadd.f32 %v687_v22, %v341_v23 }
  0xea   : > { %v690_v26 = vpop.f32.mrf.mxu0  ;;  %v1035_v27 = vpop.f32.mrf.mxu1 }
  0xeb   : > { %423 = vst [vmem:[%s979_s8 + $0x18] sm:$0xff] %v690_v26  ;;  %428 = vst [vmem:[%s979_s8 + $0x40] sm:$0xff] %v1035_v27  ;;  %v477_v32 = vadd.f32 %v462_v28, %v461_v25  ;;  %v464_v37 = vmul.f32 %v690_v26, %v690_v26 }
  0xec   : > { %v351_v30 = vpop.f32.mrf.mxu0  ;;  %v1040_v31 = vpop.f32.mrf.mxu1 }
  0xed   : > { %422 = vst [vmem:[%s979_s8 + $0x10] sm:$0xff] %v351_v30  ;;  %v438_v33 = vadd.f32 %v437_v29, %v351_v30  ;;  %v463_v34 = vmul.f32 %v351_v30, %v351_v30  ;;  %431 = vst [vmem:[%s979_s8 + $0x58] sm:$0xff] %v1040_v31 }
  0xee   : > { %v693_v35 = vpop.f32.mrf.mxu0  ;;  %v1045_v36 = vpop.f32.mrf.mxu1 }
  0xef   : > { %v478_v38 = vadd.f32 %v477_v32, %v463_v34  ;;  %425 = vst [vmem:[%s979_s8 + $0x28] sm:$0xff] %v693_v35  ;;  %v439_v39 = vadd.f32 %v690_v26, %v438_v33  ;;  %430 = vst [vmem:[%s979_s8 + $0x50] sm:$0xff] %v1045_v36  ;;  %v466_v47 = vmul.f32 %v693_v35, %v693_v35 }
  0xf0   : > { %v361_v40 = vpop.f32.mrf.mxu0  ;;  %v1050_v41 = vpop.f32.mrf.mxu1 }
  0xf1   : > { %424 = vst [vmem:[%s979_s8 + $0x20] sm:$0xff] %v361_v40  ;;  %v440_v42 = vadd.f32 %v439_v39, %v361_v40  ;;  %v465_v43 = vmul.f32 %v361_v40, %v361_v40  ;;  %v479_v44 = vadd.f32 %v478_v38, %v464_v37  ;;  %433 = vst [vmem:[%s979_s8 + $0x68] sm:$0xff] %v1050_v41 }
  0xf2   : > { %v696_v45 = vpop.f32.mrf.mxu0  ;;  %v401_v46 = vpop.f32.mrf.mxu1 }
  0xf3   : > { %v480_v48 = vadd.f32 %v479_v44, %v465_v43  ;;  %427 = vst [vmem:[%s979_s8 + $0x38] sm:$0xff] %v696_v45  ;;  %v441_v49 = vadd.f32 %v693_v35, %v440_v42  ;;  %432 = vst [vmem:[%s979_s8 + $0x60] sm:$0xff] %v401_v46  ;;  %v468_v56 = vmul.f32 %v696_v45, %v696_v45 }
  0xf4   : > { %v371_v50 = vpop.f32.mrf.mxu0  ;;  %v708_v51 = vpop.f32.mrf.mxu1 }
  0xf5   : > { %426 = vst [vmem:[%s979_s8 + $0x30] sm:$0xff] %v371_v50  ;;  %v442_v52 = vadd.f32 %v441_v49, %v371_v50  ;;  %v467_v53 = vmul.f32 %v371_v50, %v371_v50  ;;  %v481_v54 = vadd.f32 %v480_v48, %v466_v47  ;;  %435 = vst [vmem:[%s979_s8 + $0x78] sm:$0xff] %v708_v51 }
  0xf6   : > { %v411_v55 = vpop.f32.mrf.mxu1 }
  0xf7   : > { %v443_v57 = vadd.f32 %v696_v45, %v442_v52  ;;  %v482_v58 = vadd.f32 %v481_v54, %v467_v53  ;;  %434 = vst [vmem:[%s979_s8 + $0x70] sm:$0xff] %v411_v55 }
  0xf8   : > { %788 = shalt.err (!%p785_p7)
}
  0xf9   : > { %s789_s27 = scalar_lea.hbm %s1062_s7, 2048  ;;  %s793_s20 = scalar_lea.hbm %s1146_s2, 8192 }
  0xfa   : > { %p790_p8 = scmp.ne.s32.totalorder %s1062_s7, %s789_s27  ;;  %p794_p11 = scmp.lt.s32.totalorder %s1062_s7, %s1146_s2 }
  0xfb   : > { %p795_p12 = scmp.lt.s32.totalorder %s793_s20, %s789_s27 }
  0xfc   : > { %p791_p9 = pnand %p790_p8, %p960_p5 }
  0xfd   : > { %p796_p13 = por %p795_p12, %p794_p11 }
  0xfe   : > { %p792_p10 = pneg %p791_p9 }
 0x100   : > { %p797_p0 = pnand %p796_p13, %p792_p10 }
 0x102   : > { %800 = shalt.err (!%p797_p0)
}
 0x103   : > { %s891_s28 = smov 128   ;;  %s892_s29 = smov 8   ;;  %v483_v59 = vadd.f32 %v482_v58, %v468_v56  ;;  %v444_v60 = vadd.f32 %v443_v57, %v1035_v27  ;;  %v469_v61 = vmul.f32 %v1035_v27, %v1035_v27  ;;  %v470_v62 = vmul.f32 %v1030_v24, %v1030_v24  ;;  %v436_v29 = vld [vmem:[#allocation4] sm:$0x1]  ;;  %v460_v32 = vld [vmem:[#allocation6] sm:$0x1] }
 0x104   : > { %719 = dma.vmem_to_hbm [thread:$0]  (%p960_p5), %s1064_s30, 2048, %s1062_s7, %s1071_s9, %s891_s28, %s891_s28, %s892_s29   ;;  %v471_v2 = vmul.f32 %v1045_v36, %v1045_v36  ;;  %v472_v4 = vmul.f32 %v1040_v31, %v1040_v31  ;;  %v473_v8 = vmul.f32 %v401_v46, %v401_v46  ;;  %v474_v10 = vmul.f32 %v1050_v41, %v1050_v41 }
 0x105   : > { %v484_v63 = vadd.f32 %v483_v59, %v469_v61  ;;  %v445_v0 = vadd.f32 %v1030_v24, %v444_v60  ;;  %v475_v14 = vmul.f32 %v411_v55, %v411_v55  ;;  %v476_v16 = vmul.f32 %v708_v51, %v708_v51  ;;  %s893_s25 = smov [#allocation4]   ;;  %s894_s5 = smov [#allocation6]  }
 0x106   : > { %s528_s30 = sshll.u32 %s893_s25, 4  ;;  %s539_s6 = sshll.u32 %s894_s5, 4  ;;  %s529_s30 = int_to_ptr.vmem [resolvable:$true] %s528_s30  ;;  %s540_s6 = int_to_ptr.vmem [resolvable:$true] %s539_s6 }
 0x107   : > { %v446_v1 = vadd.f32 %v445_v0, %v1045_v36  ;;  %v485_v3 = vadd.f32 %v484_v63, %v470_v62  ;;  %s801_s7 = scalar_lea.vmem %s529_s30, 16  ;;  %s807_s9 = scalar_lea.vmem %s529_s30, 32 }
 0x108   : > { %p802_p5 = scmp.ne.s32.totalorder %s529_s30, %s801_s7  ;;  %p808_p4 = scmp.lt.s32.totalorder %s529_s30, %s529_s30 }
 0x109   : > { %v486_v5 = vadd.f32 %v485_v3, %v471_v2  ;;  %v447_v6 = vadd.f32 %v1040_v31, %v446_v1  ;;  %p809_p7 = scmp.lt.s32.totalorder %s807_s9, %s801_s7 }
 0x10a   : > { %p803_p1 = pnand %p802_p5, %p84_p2 }
 0x10b   : > { %v448_v7 = vadd.f32 %v447_v6, %v401_v46  ;;  %v487_v9 = vadd.f32 %v486_v5, %v472_v4  ;;  %p810_p8 = por %p809_p7, %p808_p4 }
 0x10c   : > { %p804_p3 = pneg %p803_p1 }
 0x10d   : > { %v488_v11 = vadd.f32 %v487_v9, %v473_v8  ;;  %v449_v12 = vadd.f32 %v1050_v41, %v448_v7 }
 0x10e   : > { %p811_p9 = pnand %p810_p8, %p804_p3 }
 0x10f   : > { %v450_v13 = vadd.f32 %v449_v12, %v411_v55  ;;  %v489_v15 = vadd.f32 %v488_v11, %v474_v10 }
 0x111   : > { %v451_v17 = vadd.f32 %v708_v51, %v450_v13  ;;  %v490_v18 = vadd.f32 %v489_v15, %v475_v14 }
 0x113   : > { %v452_v19 = vrot.slane %v451_v17, 4  ;;  %v491_v20 = vadd.f32 %v490_v18, %v476_v16 }
 0x115   : > { %v453_v21 = vadd.f32 %v452_v19, %v451_v17  ;;  %v492_v22 = vrot.slane %v491_v20, 4 }
 0x117   : > { %v454_v23 = vrot.slane %v453_v21, 2  ;;  %v493_v24 = vadd.f32 %v492_v22, %v491_v20 }
 0x119   : > { %v455_v25 = vadd.f32 %v454_v23, %v453_v21  ;;  %v494_v26 = vrot.slane %v493_v24, 2 }
 0x11b   : > { %v456_v27 = vrot.slane %v455_v25, 1  ;;  %v495_v28 = vadd.f32 %v494_v26, %v493_v24 }
 0x11d   : > { %v457_v30 = vadd.f32 %v456_v27, %v455_v25  ;;  %v496_v31 = vrot.slane %v495_v28, 1 }
 0x11f   : > { %v458_v33 = vadd.f32 %v457_v30, %v436_v29  ;;  %v497_v34 = vadd.f32 %v496_v31, %v495_v28 }
 0x121   : > { %459 = vst [vmem:[#allocation4] sm:$0x1] %v458_v33  ;;  %v498_v35 = vadd.f32 %v497_v34, %v460_v32 }
 0x122   : > { %814 = shalt.err (!%p811_p9)
}
 0x123   : > { %721 = dma.vmem_to_hbm [thread:$0]  (%p84_p2), %s529_s30, 16, %s1147_s3, [#allocation5]   ;;  %499 = vst [vmem:[#allocation6] sm:$0x1] %v498_v35 }
 0x124   : > { %s825_s12 = scalar_lea.vmem %s540_s6, 16  ;;  %s831_s13 = scalar_lea.vmem %s540_s6, 32 }
 0x125   : > { %p826_p10 = scmp.ne.s32.totalorder %s540_s6, %s825_s12  ;;  %p832_p13 = scmp.lt.s32.totalorder %s540_s6, %s540_s6 }
 0x126   : > { %p833_p0 = scmp.lt.s32.totalorder %s831_s13, %s825_s12 }
 0x127   : > { %p827_p11 = pnand %p826_p10, %p84_p2 }
 0x128   : > { %p834_p5 = por %p833_p0, %p832_p13 }
 0x129   : > { %p828_p12 = pneg %p827_p11 }
 0x12b   : > { %p835_p1 = pnand %p834_p5, %p828_p12 }
 0x12d   : > { %838 = shalt.err (!%p835_p1)
}
 0x12e   : > { %723 = dma.vmem_to_hbm [thread:$0]  (%p84_p2), %s540_s6, 16, %s1148_s4, [#allocation5]  }
 0x12f   : > { %866 = dma.done.wait (%p84_p2), [#allocation5], 32  }
 0x130   : > { %868 = vsyncadd (%p84_p2), [#allocation5], 4294967264 }
 0x131 PF: > { %p737_p3 = scmp.ge.s32.totalorder %s887_s18, 2  ;;  %s559_s14 = sand.u32 1, %s875_s15  }
 0x132   : > { %s560_s20 = scalar_lea.sflag [#allocation3], %s559_s14 }
 0x133   : > { %p730_p4 = pnand %p737_p3, %p964_p6 }
 0x135   : > { %p731_p7 = pneg %p730_p4 }
 0x137   : > { %870 = dma.done.wait (%p731_p7), %s560_s20, 2048  }
 0x138   : > { %872 = vsyncadd (%p731_p7), %s560_s20, 4294965248  ;;  %p16_p8 = scmp.ge.s32.totalorder %s945_s21, 6   ;;  %s1151_s15 = smov %s879_s16 }
 0x139   : > { %s1152_s16 = smov %s883_s17  ;;  %s1153_s17 = smov %s956_s24 }
 0x13a   : > { %s1154_s18 = smov %s945_s21  ;;  %18 = sbr.rel (!%p16_p8) target bundleno = 4 (0x4), region = 83 }
 0x13f   :  { %565 = vsyncpa [#allocation3], 1 }
 0x140   :  { %567 = vsyncpa [#allocation3 + $0x1], 1 }
 0x141   :  { %568 = vsyncpa [#allocation5], 1 }

</bundles_post_ra>
